<compile_context>
chip_gen: v7x
topology: tpu7x:2x2x1
jax: 0.10.0
libtpu: 0.0.40
codegen_flags: <defaults>
</compile_context>

<pallas_src>
import jax
import jax.numpy as jnp
from jax.experimental import pallas as pl
from jax.experimental.pallas import tpu as pltpu


# ----------------------------------------------------------------------------
# Pallas kernel: apply separable time / frequency keep masks to one tile.
# ----------------------------------------------------------------------------
def _apply_mask_kernel(keep_t_ref, keep_f_ref, x_ref, o_ref):
    # keep_t_ref: (Bt, Tt, 1), keep_f_ref: (Bt, 1, F), x_ref/o_ref: (Bt, Tt, F)
    # Two VPU multiplies per element; the kernel stays at the HBM roofline.
    o_ref[...] = x_ref[...] * keep_t_ref[...] * keep_f_ref[...]


def _choose_tiles(B, T, F, itemsize):
    """Pick (tile_b, tile_t) giving ~2 MiB feature tiles.

    Big enough to amortize the ~0.35 us per-grid-step overhead (>=85% of HBM
    roofline in the measured tile sweeps), small enough that double-buffered
    input + output (4 buffers) fits the default scoped VMEM on v5e/v6e/v7x.
    """
    target_bytes = 2 * 1024 * 1024
    if T <= 512:
        tile_t = T                      # full time axis (block dim == array dim)
    else:
        tile_t = 512                    # multiple of 8 (sublane) and 128 (lane)
        while tile_t > 128 and tile_t * F * itemsize > target_bytes:
            tile_t //= 2
    bytes_per_batch_row = max(tile_t * F * itemsize, 1)
    tile_b = max(1, min(B, target_bytes // bytes_per_batch_row))
    return int(tile_b), int(tile_t)


def apply_specaugment_masks(audio_features, keep_t, keep_f):
    """Apply separable keep masks with a Pallas TPU kernel.

    audio_features: [B, T, F]
    keep_t:         [B, T, 1] (0/1, same dtype as audio_features)
    keep_f:         [B, 1, F] (0/1, same dtype as audio_features)
    """
    B, T, F = audio_features.shape
    tile_b, tile_t = _choose_tiles(B, T, F, jnp.dtype(audio_features.dtype).itemsize)
    grid = (pl.cdiv(B, tile_b), pl.cdiv(T, tile_t))

    return pl.pallas_call(
        _apply_mask_kernel,
        out_shape=jax.ShapeDtypeStruct((B, T, F), audio_features.dtype),
        grid=grid,
        in_specs=[
            pl.BlockSpec((tile_b, tile_t, 1), lambda i, j: (i, j, 0)),   # keep_t
            pl.BlockSpec((tile_b, 1, F), lambda i, j: (i, 0, 0)),        # keep_f
            pl.BlockSpec((tile_b, tile_t, F), lambda i, j: (i, j, 0)),   # features
        ],
        out_specs=pl.BlockSpec((tile_b, tile_t, F), lambda i, j: (i, j, 0)),
        # In-place masking: alias the feature input (index 2) with the output.
        input_output_aliases={2: 0},
        compiler_params=pltpu.CompilerParams(
            dimension_semantics=("parallel", "parallel")),
    )(keep_t, keep_f, audio_features)


# ----------------------------------------------------------------------------
# Mask-parameter sampling (plain JAX; tiny compared with the [B,T,F] slab).
# ----------------------------------------------------------------------------
def _sample_axis_keep_mask(key, batch, dim, min_num, max_num, mask_max_size):
    """Build a [batch, dim] boolean keep mask (True = keep).

    Matches i6_models' _random_mask_v1 semantics:
      num_masks : single draw, inclusive [min_num, max_num]
      start     : per batch element, uniform in [0, dim - 2]
      length    : per batch element, uniform in [1, mask_max_size]
      masked range = [start, min(start + length, dim))
    """
    k_num, k_start, k_len = jax.random.split(key, 3)
    num = jax.random.randint(k_num, (), min_num, max_num + 1)                 # scalar, inclusive
    starts = jax.random.randint(k_start, (batch, max_num), 0, max(dim - 1, 1))
    lens = jax.random.randint(k_len, (batch, max_num), 1, mask_max_size + 1)
    ends = jnp.minimum(starts + lens, dim)
    active = (jnp.arange(max_num)[None, :] < num)                             # [1, max_num]
    idx = jnp.arange(dim)[None, None, :]                                      # [1, 1, dim]
    hit = (idx >= starts[:, :, None]) & (idx < ends[:, :, None]) & active[:, :, None]
    return jnp.logical_not(jnp.any(hit, axis=1))                              # [batch, dim]


def specaugment_by_length(audio_features, key, *, training=True,
                          time_min_num_masks=2, time_max_mask_per_n_frames=25,
                          time_mask_max_size=20, freq_min_num_masks=2,
                          freq_max_num_masks=5, freq_mask_max_size=8):
    """Pallas implementation of SpecaugmentByLengthModuleV1.forward ([B, T, F])."""
    if not training:
        return audio_features

    B, T, F = audio_features.shape
    time_max_num_masks = max(T // time_max_mask_per_n_frames, time_min_num_masks)

    kt, kf = jax.random.split(key)
    keep_t = _sample_axis_keep_mask(kt, B, T, time_min_num_masks,
                                    time_max_num_masks, time_mask_max_size)
    keep_f = _sample_axis_keep_mask(kf, B, F, freq_min_num_masks,
                                    freq_max_num_masks, freq_mask_max_size)

    dt = audio_features.dtype
    keep_t = keep_t.astype(dt)[:, :, None]   # [B, T, 1]
    keep_f = keep_f.astype(dt)[:, None, :]   # [B, 1, F]
    return apply_specaugment_masks(audio_features, keep_t, keep_f)


if __name__ == "__main__":
    key = jax.random.PRNGKey(0)
    k_data, k_mask = jax.random.split(key)

    # Small [B, T, F] audio-feature input consistent with the module.
    B, T, F = 2, 100, 80
    x = jax.random.normal(k_data, (B, T, F), dtype=jnp.float32)

    cfg = dict(time_min_num_masks=2, time_max_mask_per_n_frames=25,
               time_mask_max_size=20, freq_min_num_masks=2,
               freq_max_num_masks=5, freq_mask_max_size=8)

    out = specaugment_by_length(x, k_mask, training=True, **cfg)
    out = jax.block_until_ready(out)
    assert out.shape == x.shape and out.dtype == x.dtype

    # Reference check: rebuild the identical keep masks (same key path) in
    # plain JAX and compare element-for-element with the Pallas result.
    kt_key, kf_key = jax.random.split(k_mask)
    t_max = max(T // cfg["time_max_mask_per_n_frames"], cfg["time_min_num_masks"])
    keep_t = _sample_axis_keep_mask(kt_key, B, T, cfg["time_min_num_masks"],
                                    t_max, cfg["time_mask_max_size"]).astype(x.dtype)[:, :, None]
    keep_f = _sample_axis_keep_mask(kf_key, B, F, cfg["freq_min_num_masks"],
                                    cfg["freq_max_num_masks"],
                                    cfg["freq_mask_max_size"]).astype(x.dtype)[:, None, :]
    ref = x * keep_t * keep_f
    assert bool(jnp.all(out == ref))

    # Sanity: some values were masked, the rest are untouched.
    assert bool(jnp.any(out == 0.0))
    assert bool(jnp.all((out == x) | (out == 0.0)))

    # Eval mode is identity (handled in the wrapper, like the PyTorch module).
    out_eval = specaugment_by_length(x, k_mask, training=False, **cfg)
    assert bool(jnp.all(out_eval == x))

    print("KERNEL_OK")
</pallas_src>

<mosaic_0001>
module attributes {stable_mosaic.version = 11 : i64} {
  func.func @_apply_mask_kernel(%arg0: i32, %arg1: i32, %arg2: memref<2x100x1xf32, #tpu.memory_space<vmem>>, %arg3: memref<2x1x80xf32, #tpu.memory_space<vmem>>, %arg4: memref<2x100x80xf32, #tpu.memory_space<vmem>>, %arg5: memref<2x100x80xf32, #tpu.memory_space<vmem>>) attributes {dimension_semantics = [#tpu.dimension_semantics<parallel>, #tpu.dimension_semantics<parallel>], iteration_bounds = array<i64: 1, 1>, scalar_prefetch = 0 : i64, scratch_operands = 0 : i64, tpu.core_type = #tpu.core_type<tc>, window_params = [{transform_indices = @transform_0, window_bounds = array<i64: 2, 100, 1>}, {transform_indices = @transform_1, window_bounds = array<i64: 2, 1, 80>}, {transform_indices = @transform_2, window_bounds = array<i64: 2, 100, 80>}, {transform_indices = @transform_3, window_bounds = array<i64: 2, 100, 80>}]} {
    %c0 = arith.constant 0 : index
    %c0_0 = arith.constant 0 : index
    %c0_1 = arith.constant 0 : index
    %0 = vector.load %arg4[%c0, %c0_0, %c0_1] : memref<2x100x80xf32, #tpu.memory_space<vmem>>, vector<2x100x80xf32>
    %c0_2 = arith.constant 0 : index
    %c0_3 = arith.constant 0 : index
    %c0_4 = arith.constant 0 : index
    %1 = vector.load %arg2[%c0_2, %c0_3, %c0_4] : memref<2x100x1xf32, #tpu.memory_space<vmem>>, vector<2x100x1xf32>
    %2 = vector.broadcast %1 : vector<2x100x1xf32> to vector<2x100x80xf32>
    %3 = arith.mulf %0, %2 : vector<2x100x80xf32>
    %c0_5 = arith.constant 0 : index
    %c0_6 = arith.constant 0 : index
    %c0_7 = arith.constant 0 : index
    %4 = vector.load %arg3[%c0_5, %c0_6, %c0_7] : memref<2x1x80xf32, #tpu.memory_space<vmem>>, vector<2x1x80xf32>
    %5 = vector.broadcast %4 : vector<2x1x80xf32> to vector<2x100x80xf32>
    %6 = arith.mulf %3, %5 : vector<2x100x80xf32>
    %c0_8 = arith.constant 0 : index
    %c0_9 = arith.constant 0 : index
    %c0_10 = arith.constant 0 : index
    %7 = vector.load %arg5[%c0_8, %c0_9, %c0_10] : memref<2x100x80xf32, #tpu.memory_space<vmem>>, vector<2x100x80xf32>
    tpu.vector_store %arg5[%c0_8, %c0_9, %c0_10], %6 {strides = array<i32>} : memref<2x100x80xf32, #tpu.memory_space<vmem>>, vector<2x100x80xf32>,
    return
  }
  func.func @transform_0(%arg0: i32, %arg1: i32) -> (i32, i32, i32) {
    %c0_i32 = arith.constant 0 : i32
    %c0_i32_0 = arith.constant 0 : i32
    return %arg0, %arg1, %c0_i32 : i32, i32, i32
  }
  func.func @transform_1(%arg0: i32, %arg1: i32) -> (i32, i32, i32) {
    %c0_i32 = arith.constant 0 : i32
    %c0_i32_0 = arith.constant 0 : i32
    %c0_i32_1 = arith.constant 0 : i32
    return %arg0, %c0_i32, %c0_i32_0 : i32, i32, i32
  }
  func.func @transform_2(%arg0: i32, %arg1: i32) -> (i32, i32, i32) {
    %c0_i32 = arith.constant 0 : i32
    %c0_i32_0 = arith.constant 0 : i32
    return %arg0, %arg1, %c0_i32 : i32, i32, i32
  }
  func.func @transform_3(%arg0: i32, %arg1: i32) -> (i32, i32, i32) {
    %c0_i32 = arith.constant 0 : i32
    %c0_i32_0 = arith.constant 0 : i32
    return %arg0, %arg1, %c0_i32 : i32, i32, i32
  }
}

</mosaic_0001>

<bundles_post_ra>
// kernel: tpu_custom_call.1
= control target key start
LH: loop header
LB: loop body
LE: loop exit
PB: predicated region body
PF: predicated region fallthrough
CT: control target
= control target key end

     0   :  { %v299_v0 = vmov 0   ;;  %vm262_vm0 = vcmask 654336   ;;  %vm275_vm1 = vcmask 650240   ;;  %s616_s0 = inlined_call_operand.vmem [shape: f32[2,100,1], index: 0, kind: input, shape index: {}]   ;;  %s617_s2 = inlined_call_operand.vmem [shape: f32[2,100,80], index: 2, kind: input, shape index: {}, may-alias: {2,3}]   ;;  %s618_s1 = inlined_call_operand.vmem [shape: f32[2,1,80], index: 1, kind: input, shape index: {}]   ;;  %s619_s3 = inlined_call_operand.vmem [shape: f32[2,100,80], index: 3, kind: output, shape index: {}, may-alias: {2,3}]  }
   0x1   :  { %298 = vset.pattern.permute.xlu1 %v299_v0  ;;  %297 = vset.pattern.permute.xlu0 %v299_v0  ;;  %v42_v1 = vld [vmem:[%s616_s0 + $0x10] sm:$0xff]  ;;  %v40_v2 = vld [vmem:[%s616_s0] sm:$0xff]  ;;  %v43_v3 = vld [vmem:[%s616_s0 + $0x18] sm:$0xff] }
   0x2   :  { %78 = vperm.xlu1 %298, %v42_v1   ;;  %68 = vperm.xlu0 %297, %v40_v2   ;;  %v41_v4 = vld [vmem:[%s616_s0 + $0x8] sm:$0xff]  ;;  %v44_v6 = vld [vmem:[%s616_s0 + $0x20] sm:$0xff]  ;;  %v47_v7 = vld [vmem:[%s616_s0 + $0x38] sm:$0xff] }
   0x3   :  { %v45_v5 = vld [vmem:[%s616_s0 + $0x28] sm:$0xff]  ;;  %v46_v8 = vld [vmem:[%s616_s0 + $0x30] sm:$0xff]  ;;  %v48_v10 = vld [vmem:[%s616_s0 + $0x40] sm:$0xff] }
   0x4   :  { %v49_v9 = vld [vmem:[%s616_s0 + $0x48] sm:$0xff]  ;;  %v51_v11 = vld [vmem:[%s616_s0 + $0x58] sm:$0xff]  ;;  %v50_v12 = vld [vmem:[%s616_s0 + $0x50] sm:$0xff] }
   0x5   :  { %v53_v13 = vld [vmem:[%s616_s0 + $0x68] sm:$0xff]  ;;  %v52_v14 = vld [vmem:[%s616_s0 + $0x60] sm:$0xf]  ;;  %v55_v15 = vld [vmem:[%s616_s0 + $0x78] sm:$0xff] }
   0x6   :  { %83 = vperm.xlu1 %298, %v43_v3   ;;  %73 = vperm.xlu0 %297, %v41_v4   ;;  %v54_v16 = vld [vmem:[%s616_s0 + $0x70] sm:$0xff]  ;;  %v57_v17 = vld [vmem:[%s616_s0 + $0x88] sm:$0xff]  ;;  %v56_v18 = vld [vmem:[%s616_s0 + $0x80] sm:$0xff] }
   0x7   :  { %v59_v19 = vld [vmem:[%s616_s0 + $0x98] sm:$0xff]  ;;  %v58_v20 = vld [vmem:[%s616_s0 + $0x90] sm:$0xff]  ;;  %v61_v21 = vld [vmem:[%s616_s0 + $0xa8] sm:$0xff] }
   0x8   :  { %v60_v22 = vld [vmem:[%s616_s0 + $0xa0] sm:$0xff]  ;;  %v63_v23 = vld [vmem:[%s616_s0 + $0xb8] sm:$0xff]  ;;  %v62_v24 = vld [vmem:[%s616_s0 + $0xb0] sm:$0xff] }
   0x9   :  { %v65_v25 = vld [vmem:[%s616_s0 + $0xc8] sm:$0xf]  ;;  %v64_v26 = vld [vmem:[%s616_s0 + $0xc0] sm:$0xff]  ;;  %v16_v27 = vld [vmem:[%s617_s2 + $0x10] sm:$0xff] }
   0xa   :  { %93 = vperm.xlu1 %298, %v45_v5   ;;  %88 = vperm.xlu0 %297, %v44_v6   ;;  %v14_v28 = vld [vmem:[%s617_s2] sm:$0xff]  ;;  %v17_v34 = vld [vmem:[%s617_s2 + $0x18] sm:$0xff]  ;;  %v15_v35 = vld [vmem:[%s617_s2 + $0x8] sm:$0xff] }
   0xb   :  { %v407_v29 = vld [vmem:[%s618_s1] ss:$0 sm:$0xff] }
   0xe   :  { %103 = vperm.xlu1 %298, %v47_v7   ;;  %98 = vperm.xlu0 %297, %v46_v8  }
  0x12   :  { %113 = vperm.xlu1 %298, %v49_v9   ;;  %108 = vperm.xlu0 %297, %v48_v10  }
  0x16   :  { %123 = vperm.xlu1 %298, %v51_v11   ;;  %118 = vperm.xlu0 %297, %v50_v12  }
  0x1a   :  { %133 = vperm.xlu1 %298, %v53_v13   ;;  %128 = vperm.xlu0 %297, %v52_v14   ;;  %v500_v14 = vld [vmem:[%s618_s1 + $0x1] ss:$0 sm:$0xff] }
  0x1e   :  { %143 = vperm.xlu1 %298, %v55_v15   ;;  %138 = vperm.xlu0 %297, %v54_v16  }
  0x22   :  { %153 = vperm.xlu1 %298, %v57_v17   ;;  %148 = vperm.xlu0 %297, %v56_v18  }
  0x26   :  { %163 = vperm.xlu1 %298, %v59_v19   ;;  %158 = vperm.xlu0 %297, %v58_v20  }
  0x2a   :  { %173 = vperm.xlu1 %298, %v61_v21   ;;  %168 = vperm.xlu0 %297, %v60_v22  }
  0x2e   :  { %183 = vperm.xlu1 %298, %v63_v23   ;;  %178 = vperm.xlu0 %297, %v62_v24  }
  0x32   :  { %193 = vperm.xlu1 %298, %v65_v25   ;;  %188 = vperm.xlu0 %297, %v64_v26  }
  0x81   :  { %v79_v30 = vpop.permute.xlu1 %78  ;;  %v69_v31 = vpop.permute.xlu0 %68 }
  0x82   :  { %v198_v32 = vmul.f32 %v79_v30, %v16_v27  ;;  %v196_v33 = vmul.f32 %v69_v31, %v14_v28 }
  0x84   :  { %v238_v36 = vmul.f32 %v407_v29, %v198_v32  ;;  %v236_v37 = vmul.f32 %v407_v29, %v196_v33 }
  0x85   :  { %v84_v38 = vpop.permute.xlu1 %83  ;;  %v74_v39 = vpop.permute.xlu0 %73 }
  0x86   :  { %265 = vst.msk [vmem:[%s619_s3 + $0x10] sm:$0xff] %vm262_vm0, %v238_v36  ;;  %263 = vst.msk [vmem:[%s619_s3] sm:$0xff] %vm262_vm0, %v236_v37  ;;  %v199_v40 = vmul.f32 %v84_v38, %v17_v34  ;;  %v197_v41 = vmul.f32 %v74_v39, %v15_v35 }
  0x88   :  { %v239_v44 = vmul.f32 %v407_v29, %v199_v40  ;;  %v237_v45 = vmul.f32 %v407_v29, %v197_v41 }
  0x89   :  { %v94_v46 = vpop.permute.xlu1 %93  ;;  %v89_v47 = vpop.permute.xlu0 %88 }
  0x8d   :  { %v19_v42 = vld [vmem:[%s617_s2 + $0x28] sm:$0xff]  ;;  %v18_v43 = vld [vmem:[%s617_s2 + $0x20] sm:$0xff]  ;;  %v104_v54 = vpop.permute.xlu1 %103  ;;  %v99_v55 = vpop.permute.xlu0 %98 }
  0x8e   :  { %266 = vst.msk [vmem:[%s619_s3 + $0x18] sm:$0xff] %vm262_vm0, %v239_v44  ;;  %264 = vst.msk [vmem:[%s619_s3 + $0x8] sm:$0xff] %vm262_vm0, %v237_v45  ;;  %v201_v48 = vmul.f32 %v94_v46, %v19_v42  ;;  %v200_v49 = vmul.f32 %v89_v47, %v18_v43 }
  0x90   :  { %v241_v52 = vmul.f32 %v407_v29, %v201_v48  ;;  %v240_v53 = vmul.f32 %v407_v29, %v200_v49 }
  0x91   :  { %v114_v62 = vpop.permute.xlu1 %113  ;;  %v109_v63 = vpop.permute.xlu0 %108 }
  0x95   :  { %v21_v50 = vld [vmem:[%s617_s2 + $0x38] sm:$0xff]  ;;  %v20_v51 = vld [vmem:[%s617_s2 + $0x30] sm:$0xff]  ;;  %v124_v6 = vpop.permute.xlu1 %123  ;;  %v119_v7 = vpop.permute.xlu0 %118 }
  0x96   :  { %268 = vst.msk [vmem:[%s619_s3 + $0x28] sm:$0xff] %vm262_vm0, %v241_v52  ;;  %267 = vst.msk [vmem:[%s619_s3 + $0x20] sm:$0xff] %vm262_vm0, %v240_v53  ;;  %v203_v56 = vmul.f32 %v104_v54, %v21_v50  ;;  %v202_v57 = vmul.f32 %v99_v55, %v20_v51 }
  0x98   :  { %v243_v60 = vmul.f32 %v407_v29, %v203_v56  ;;  %v242_v61 = vmul.f32 %v407_v29, %v202_v57 }
  0x99   :  { %v134_v15 = vpop.permute.xlu1 %133  ;;  %v129_v16 = vpop.permute.xlu0 %128 }
  0x9d   :  { %v23_v58 = vld [vmem:[%s617_s2 + $0x48] sm:$0xff]  ;;  %v22_v59 = vld [vmem:[%s617_s2 + $0x40] sm:$0xff]  ;;  %v144_v23 = vpop.permute.xlu1 %143  ;;  %v139_v24 = vpop.permute.xlu0 %138 }
  0x9e   :  { %270 = vst.msk [vmem:[%s619_s3 + $0x38] sm:$0xff] %vm262_vm0, %v243_v60  ;;  %269 = vst.msk [vmem:[%s619_s3 + $0x30] sm:$0xff] %vm262_vm0, %v242_v61  ;;  %v205_v0 = vmul.f32 %v114_v62, %v23_v58  ;;  %v204_v1 = vmul.f32 %v109_v63, %v22_v59 }
  0xa0   :  { %v245_v4 = vmul.f32 %v407_v29, %v205_v0  ;;  %v244_v5 = vmul.f32 %v407_v29, %v204_v1 }
  0xa1   :  { %v154_v31 = vpop.permute.xlu1 %153  ;;  %v149_v32 = vpop.permute.xlu0 %148 }
  0xa5   :  { %v25_v2 = vld [vmem:[%s617_s2 + $0x58] sm:$0xff]  ;;  %v24_v3 = vld [vmem:[%s617_s2 + $0x50] sm:$0xff]  ;;  %v164_v39 = vpop.permute.xlu1 %163  ;;  %v159_v40 = vpop.permute.xlu0 %158 }
  0xa6   :  { %272 = vst.msk [vmem:[%s619_s3 + $0x48] sm:$0xff] %vm262_vm0, %v245_v4  ;;  %271 = vst.msk [vmem:[%s619_s3 + $0x40] sm:$0xff] %vm262_vm0, %v244_v5  ;;  %v207_v8 = vmul.f32 %v124_v6, %v25_v2  ;;  %v206_v9 = vmul.f32 %v119_v7, %v24_v3 }
  0xa8   :  { %v247_v12 = vmul.f32 %v407_v29, %v207_v8  ;;  %v246_v13 = vmul.f32 %v407_v29, %v206_v9 }
  0xa9   :  { %v174_v47 = vpop.permute.xlu1 %173  ;;  %v169_v48 = vpop.permute.xlu0 %168 }
  0xad   :  { %v27_v10 = vld [vmem:[%s617_s2 + $0x68] sm:$0xff]  ;;  %v26_v11 = vld [vmem:[%s617_s2 + $0x60] sm:$0xf]  ;;  %v184_v55 = vpop.permute.xlu1 %183  ;;  %v179_v56 = vpop.permute.xlu0 %178 }
  0xae   :  { %274 = vst.msk [vmem:[%s619_s3 + $0x58] sm:$0xff] %vm262_vm0, %v247_v12  ;;  %273 = vst.msk [vmem:[%s619_s3 + $0x50] sm:$0xff] %vm262_vm0, %v246_v13  ;;  %v209_v17 = vmul.f32 %v134_v15, %v27_v10  ;;  %v208_v18 = vmul.f32 %v129_v16, %v26_v11 }
  0xb0   :  { %v249_v21 = vmul.f32 %v500_v14, %v209_v17  ;;  %v248_v22 = vmul.f32 %v407_v29, %v208_v18 }
  0xb1   :  { %v194_v63 = vpop.permute.xlu1 %193  ;;  %v189_v0 = vpop.permute.xlu0 %188 }
  0xb5   :  { %v29_v19 = vld [vmem:[%s617_s2 + $0x78] sm:$0xff]  ;;  %v28_v20 = vld [vmem:[%s617_s2 + $0x70] sm:$0xff] }
  0xb6   :  { %277 = vst.msk [vmem:[%s619_s3 + $0x68] sm:$0xff] %vm262_vm0, %v249_v21  ;;  %v211_v25 = vmul.f32 %v144_v23, %v29_v19  ;;  %v210_v26 = vmul.f32 %v139_v24, %v28_v20 }
  0xb7   :  { %276 = vst.msk [vmem:[%s619_s3 + $0x60] sm:$0xf] %vm275_vm1, %v248_v22 }
  0xb8   :  { %v251_v29 = vmul.f32 %v500_v14, %v211_v25  ;;  %v250_v30 = vmul.f32 %v500_v14, %v210_v26 }
  0xbe   :  { %v31_v27 = vld [vmem:[%s617_s2 + $0x88] sm:$0xff]  ;;  %v30_v28 = vld [vmem:[%s617_s2 + $0x80] sm:$0xff] }
  0xbf   :  { %279 = vst.msk [vmem:[%s619_s3 + $0x78] sm:$0xff] %vm262_vm0, %v251_v29  ;;  %278 = vst.msk [vmem:[%s619_s3 + $0x70] sm:$0xff] %vm262_vm0, %v250_v30  ;;  %v213_v33 = vmul.f32 %v154_v31, %v31_v27  ;;  %v212_v34 = vmul.f32 %v149_v32, %v30_v28 }
  0xc1   :  { %v253_v37 = vmul.f32 %v500_v14, %v213_v33  ;;  %v252_v38 = vmul.f32 %v500_v14, %v212_v34 }
  0xc6   :  { %v33_v35 = vld [vmem:[%s617_s2 + $0x98] sm:$0xff]  ;;  %v32_v36 = vld [vmem:[%s617_s2 + $0x90] sm:$0xff] }
  0xc7   :  { %281 = vst.msk [vmem:[%s619_s3 + $0x88] sm:$0xff] %vm262_vm0, %v253_v37  ;;  %280 = vst.msk [vmem:[%s619_s3 + $0x80] sm:$0xff] %vm262_vm0, %v252_v38  ;;  %v215_v41 = vmul.f32 %v164_v39, %v33_v35  ;;  %v214_v42 = vmul.f32 %v159_v40, %v32_v36 }
  0xc9   :  { %v255_v45 = vmul.f32 %v500_v14, %v215_v41  ;;  %v254_v46 = vmul.f32 %v500_v14, %v214_v42 }
  0xce   :  { %v35_v43 = vld [vmem:[%s617_s2 + $0xa8] sm:$0xff]  ;;  %v34_v44 = vld [vmem:[%s617_s2 + $0xa0] sm:$0xff] }
  0xcf   :  { %283 = vst.msk [vmem:[%s619_s3 + $0x98] sm:$0xff] %vm262_vm0, %v255_v45  ;;  %282 = vst.msk [vmem:[%s619_s3 + $0x90] sm:$0xff] %vm262_vm0, %v254_v46  ;;  %v217_v49 = vmul.f32 %v174_v47, %v35_v43  ;;  %v216_v50 = vmul.f32 %v169_v48, %v34_v44 }
  0xd1   :  { %v257_v53 = vmul.f32 %v500_v14, %v217_v49  ;;  %v256_v54 = vmul.f32 %v500_v14, %v216_v50 }
  0xd6   :  { %v37_v51 = vld [vmem:[%s617_s2 + $0xb8] sm:$0xff]  ;;  %v36_v52 = vld [vmem:[%s617_s2 + $0xb0] sm:$0xff] }
  0xd7   :  { %285 = vst.msk [vmem:[%s619_s3 + $0xa8] sm:$0xff] %vm262_vm0, %v257_v53  ;;  %284 = vst.msk [vmem:[%s619_s3 + $0xa0] sm:$0xff] %vm262_vm0, %v256_v54  ;;  %v219_v57 = vmul.f32 %v184_v55, %v37_v51  ;;  %v218_v58 = vmul.f32 %v179_v56, %v36_v52 }
  0xd9   :  { %v259_v61 = vmul.f32 %v500_v14, %v219_v57  ;;  %v258_v62 = vmul.f32 %v500_v14, %v218_v58 }
  0xde   :  { %v39_v59 = vld [vmem:[%s617_s2 + $0xc8] sm:$0xf]  ;;  %v38_v60 = vld [vmem:[%s617_s2 + $0xc0] sm:$0xff] }
  0xdf   :  { %287 = vst.msk [vmem:[%s619_s3 + $0xb8] sm:$0xff] %vm262_vm0, %v259_v61  ;;  %286 = vst.msk [vmem:[%s619_s3 + $0xb0] sm:$0xff] %vm262_vm0, %v258_v62  ;;  %v221_v1 = vmul.f32 %v194_v63, %v39_v59  ;;  %v220_v2 = vmul.f32 %v189_v0, %v38_v60 }
  0xe1   :  { %v261_v3 = vmul.f32 %v500_v14, %v221_v1  ;;  %v260_v4 = vmul.f32 %v500_v14, %v220_v2 }
  0xe3   :  { %289 = vst.msk [vmem:[%s619_s3 + $0xc8] sm:$0xf] %vm275_vm1, %v261_v3 }
  0xe4   :  { %288 = vst.msk [vmem:[%s619_s3 + $0xc0] sm:$0xff] %vm262_vm0, %v260_v4 }

</bundles_post_ra>
